<compile_context>
chip_gen: v6e
topology: v6e:2x2x1
jax: 0.10.0
libtpu: 0.0.40
codegen_flags: <defaults>
</compile_context>

<pallas_src>
import functools

import jax
import jax.numpy as jnp
from jax.experimental import pallas as pl
from jax.experimental.pallas import tpu as pltpu

LANE = 128


def _round_up(n, m):
    return ((n + m - 1) // m) * m


def _pad2(x, shape):
    return jnp.pad(x, ((0, shape[0] - x.shape[0]), (0, shape[1] - x.shape[1])))


def mu_sigma_kernel(z_ref, eps_ref, w1_ref, b1_ref, wh_ref, bh_ref, out_ref, *, zp):
    """One batch tile: hidden = relu(z@W1+b1); [mu|ls] = hidden@Wh+bh; z = eps*exp(.5*ls)+mu."""
    # hidden = relu(z @ W1 + b1)   (bf16 MXU inputs, f32 accumulate, f32 epilogue)
    hidden = jnp.dot(z_ref[...], w1_ref[...], preferred_element_type=jnp.float32)
    hidden = jnp.maximum(hidden + b1_ref[...], 0.0)
    hidden = hidden.astype(wh_ref.dtype)  # back to bf16 for the fused-head matmul

    # Fused heads: columns [0, zp) are mu, columns [zp, 2*zp) are log_sigma.
    heads = jnp.dot(hidden, wh_ref[...], preferred_element_type=jnp.float32)
    heads = heads + bh_ref[...]
    mu = heads[:, 0:zp]
    log_sigma = heads[:, zp:2 * zp]

    # Reparameterization (f32 elementwise / EUP).
    std = jnp.exp(0.5 * log_sigma)
    z = eps_ref[...] * std + mu

    # Single lane-dense output slab: [mu | log_sigma | z], 128-aligned slices.
    out_ref[:, 0:zp] = mu
    out_ref[:, zp:2 * zp] = log_sigma
    out_ref[:, 2 * zp:3 * zp] = z


def mu_sigma_encoder(z_input, params, eps, *, compute_dtype=jnp.bfloat16,
                     batch_tile=512):
    """MuSigmaEncoder forward in one Pallas kernel.

    z_input: [B, z1_dim] f32
    params : dict with w1 [z1,z2], b1 [1,z2], wmu [z2,z], bmu [1,z],
             wls [z2,z], bls [1,z]   (y = x @ W + b layout)
    eps    : [B, z_dim] f32  (the torch.randn_like draw, produced in the wrapper)
    Returns (mu, log_sigma, z), each [B, z_dim] f32.
    """
    B, z1 = z_input.shape
    z2 = params["w1"].shape[1]
    zd = params["wmu"].shape[1]

    z1p = _round_up(z1, LANE)
    z2p = _round_up(z2, LANE)
    zp = _round_up(zd, LANE)

    # Batch tile: multiple of 8 sublanes, capped so VMEM stays tiny even on v7x
    # (2 bufs x (z tile + eps tile + out slab) + resident weights << 32 MiB).
    tb = min(batch_tile, _round_up(B, 8))
    bp = _round_up(B, tb)

    # --- wrapper-side layout prep (zero padding + bf16 casts + head fusion) ---
    z_p = _pad2(z_input, (bp, z1p)).astype(compute_dtype)
    eps_p = _pad2(eps, (bp, zp)).astype(jnp.float32)

    w1 = _pad2(params["w1"], (z1p, z2p)).astype(compute_dtype)
    b1 = _pad2(params["b1"], (1, z2p)).astype(jnp.float32)

    wh = jnp.concatenate(
        [_pad2(params["wmu"], (z2p, zp)), _pad2(params["wls"], (z2p, zp))],
        axis=1).astype(compute_dtype)                       # [z2p, 2*zp]
    bh = jnp.concatenate(
        [_pad2(params["bmu"], (1, zp)), _pad2(params["bls"], (1, zp))],
        axis=1).astype(jnp.float32)                         # [1, 2*zp]

    grid = (bp // tb,)
    kernel = functools.partial(mu_sigma_kernel, zp=zp)

    out = pl.pallas_call(
        kernel,
        out_shape=jax.ShapeDtypeStruct((bp, 3 * zp), jnp.float32),
        grid=grid,
        in_specs=[
            pl.BlockSpec((tb, z1p), lambda i: (i, 0)),       # z_input tile
            pl.BlockSpec((tb, zp), lambda i: (i, 0)),        # eps tile
            pl.BlockSpec((z1p, z2p), lambda i: (0, 0)),      # W1 (resident)
            pl.BlockSpec((1, z2p), lambda i: (0, 0)),        # b1 (resident)
            pl.BlockSpec((z2p, 2 * zp), lambda i: (0, 0)),   # fused head W (resident)
            pl.BlockSpec((1, 2 * zp), lambda i: (0, 0)),     # fused head b (resident)
        ],
        out_specs=pl.BlockSpec((tb, 3 * zp), lambda i: (i, 0)),
        compiler_params=pltpu.CompilerParams(
            dimension_semantics=("parallel",)),
    )(z_p, eps_p, w1, b1, wh, bh)

    mu = out[:B, 0:zd]
    log_sigma = out[:B, zp:zp + zd]
    z = out[:B, 2 * zp:2 * zp + zd]
    return mu, log_sigma, z


def init_params(key, z1_dim, z2_dim, z_dim):
    """Deterministic parameter init (uniform, like PyTorch Linear default)."""
    ks = jax.random.split(key, 6)

    def lin(kw, kb, fan_in, fan_out):
        bound = 1.0 / jnp.sqrt(fan_in)
        w = jax.random.uniform(kw, (fan_in, fan_out), jnp.float32, -bound, bound)
        b = jax.random.uniform(kb, (1, fan_out), jnp.float32, -bound, bound)
        return w, b

    w1, b1 = lin(ks[0], ks[1], z1_dim, z2_dim)
    wmu, bmu = lin(ks[2], ks[3], z2_dim, z_dim)
    wls, bls = lin(ks[4], ks[5], z2_dim, z_dim)
    return {"w1": w1, "b1": b1, "wmu": wmu, "bmu": bmu, "wls": wls, "bls": bls}


def reference_forward(z_input, params, eps, compute_dtype=jnp.bfloat16):
    """Pure-JAX reference using the same bf16-in / f32-accumulate numerics."""
    zin = z_input.astype(compute_dtype)
    hidden = jnp.dot(zin, params["w1"].astype(compute_dtype),
                     preferred_element_type=jnp.float32) + params["b1"]
    hidden = jnp.maximum(hidden, 0.0).astype(compute_dtype)
    mu = jnp.dot(hidden, params["wmu"].astype(compute_dtype),
                 preferred_element_type=jnp.float32) + params["bmu"]
    log_sigma = jnp.dot(hidden, params["wls"].astype(compute_dtype),
                        preferred_element_type=jnp.float32) + params["bls"]
    std = jnp.exp(0.5 * log_sigma)
    z = eps * std + mu
    return mu, log_sigma, z


if __name__ == "__main__":
    # Small shapes consistent with the module: z1_dim -> z2_dim -> z_dim
    batch, z1_dim, z2_dim, z_dim = 8, 32, 64, 16

    key = jax.random.PRNGKey(0)
    k_params, k_in, k_eps = jax.random.split(key, 3)

    params = init_params(k_params, z1_dim, z2_dim, z_dim)
    z_input = jax.random.normal(k_in, (batch, z1_dim), jnp.float32)
    # eps corresponds to torch.randn_like(std); drawn deterministically here.
    eps = jax.random.normal(k_eps, (batch, z_dim), jnp.float32)

    mu, log_sigma, z = mu_sigma_encoder(z_input, params, eps)
    jax.block_until_ready((mu, log_sigma, z))

    mu_ref, ls_ref, z_ref = reference_forward(z_input, params, eps)
    assert mu.shape == (batch, z_dim)
    assert jnp.allclose(mu, mu_ref, atol=1e-3, rtol=1e-3)
    assert jnp.allclose(log_sigma, ls_ref, atol=1e-3, rtol=1e-3)
    assert jnp.allclose(z, z_ref, atol=1e-3, rtol=1e-3)

    print("KERNEL_OK")
</pallas_src>

<mosaic_0001>
module attributes {stable_mosaic.version = 11 : i64} {
  func.func @mu_sigma_kernel(%arg0: i32, %arg1: memref<8x128xbf16, #tpu.memory_space<vmem>>, %arg2: memref<8x128xf32, #tpu.memory_space<vmem>>, %arg3: memref<128x128xbf16, #tpu.memory_space<vmem>>, %arg4: memref<1x128xf32, #tpu.memory_space<vmem>>, %arg5: memref<128x256xbf16, #tpu.memory_space<vmem>>, %arg6: memref<1x256xf32, #tpu.memory_space<vmem>>, %arg7: memref<8x384xf32, #tpu.memory_space<vmem>>) attributes {dimension_semantics = [#tpu.dimension_semantics<parallel>], iteration_bounds = array<i64: 1>, scalar_prefetch = 0 : i64, scratch_operands = 0 : i64, tpu.core_type = #tpu.core_type<tc>, window_params = [{transform_indices = @transform_0, window_bounds = array<i64: 8, 128>}, {transform_indices = @transform_1, window_bounds = array<i64: 8, 128>}, {pipeline_mode = #tpu.pipeline_mode<synchronous>, transform_indices = @transform_2, window_bounds = array<i64: 128, 128>}, {pipeline_mode = #tpu.pipeline_mode<synchronous>, transform_indices = @transform_3, window_bounds = array<i64: 1, 128>}, {pipeline_mode = #tpu.pipeline_mode<synchronous>, transform_indices = @transform_4, window_bounds = array<i64: 128, 256>}, {pipeline_mode = #tpu.pipeline_mode<synchronous>, transform_indices = @transform_5, window_bounds = array<i64: 1, 256>}, {transform_indices = @transform_6, window_bounds = array<i64: 8, 384>}]} {
    %c0 = arith.constant 0 : index
    %c0_0 = arith.constant 0 : index
    %0 = vector.load %arg1[%c0, %c0_0] : memref<8x128xbf16, #tpu.memory_space<vmem>>, vector<8x128xbf16>
    %c0_1 = arith.constant 0 : index
    %c0_2 = arith.constant 0 : index
    %1 = vector.load %arg3[%c0_1, %c0_2] : memref<128x128xbf16, #tpu.memory_space<vmem>>, vector<128x128xbf16>
    %cst = arith.constant dense<0.000000e+00> : vector<8x128xf32>
    %2 = tpu.matmul %0, %1, %cst {dimension_numbers = #tpu.dot_dimension_numbers<[1], [0], [0], [1], [0, 0, 1, 1], [], []>} : vector<8x128xbf16>, vector<128x128xbf16>, vector<8x128xf32> -> vector<8x128xf32>
    %c0_3 = arith.constant 0 : index
    %c0_4 = arith.constant 0 : index
    %3 = vector.load %arg4[%c0_3, %c0_4] : memref<1x128xf32, #tpu.memory_space<vmem>>, vector<1x128xf32>
    %4 = vector.broadcast %3 : vector<1x128xf32> to vector<8x128xf32>
    %5 = arith.addf %2, %4 : vector<8x128xf32>
    %cst_5 = arith.constant 0.000000e+00 : f32
    %6 = vector.broadcast %cst_5 : f32 to vector<8x128xf32>
    %7 = arith.maximumf %5, %6 : vector<8x128xf32>
    %8 = arith.truncf %7 : vector<8x128xf32> to vector<8x128xbf16>
    %c0_6 = arith.constant 0 : index
    %c0_7 = arith.constant 0 : index
    %9 = vector.load %arg5[%c0_6, %c0_7] : memref<128x256xbf16, #tpu.memory_space<vmem>>, vector<128x256xbf16>
    %cst_8 = arith.constant dense<0.000000e+00> : vector<8x256xf32>
    %10 = tpu.matmul %8, %9, %cst_8 {dimension_numbers = #tpu.dot_dimension_numbers<[1], [0], [0], [1], [0, 0, 1, 1], [], []>} : vector<8x128xbf16>, vector<128x256xbf16>, vector<8x256xf32> -> vector<8x256xf32>
    %c0_9 = arith.constant 0 : index
    %c0_10 = arith.constant 0 : index
    %11 = vector.load %arg6[%c0_9, %c0_10] : memref<1x256xf32, #tpu.memory_space<vmem>>, vector<1x256xf32>
    %12 = vector.broadcast %11 : vector<1x256xf32> to vector<8x256xf32>
    %13 = arith.addf %10, %12 : vector<8x256xf32>
    %14 = vector.extract_strided_slice %13 {offsets = [0, 0], sizes = [8, 128], strides = [1, 1]} : vector<8x256xf32> to vector<8x128xf32>
    %15 = vector.extract_strided_slice %13 {offsets = [0, 128], sizes = [8, 128], strides = [1, 1]} : vector<8x256xf32> to vector<8x128xf32>
    %cst_11 = arith.constant 5.000000e-01 : f32
    %16 = vector.broadcast %cst_11 : f32 to vector<8x128xf32>
    %17 = arith.mulf %16, %15 : vector<8x128xf32>
    %18 = math.exp %17 : vector<8x128xf32>
    %c0_12 = arith.constant 0 : index
    %c0_13 = arith.constant 0 : index
    %19 = vector.load %arg2[%c0_12, %c0_13] : memref<8x128xf32, #tpu.memory_space<vmem>>, vector<8x128xf32>
    %20 = arith.mulf %19, %18 : vector<8x128xf32>
    %21 = arith.addf %20, %14 : vector<8x128xf32>
    %c0_14 = arith.constant 0 : index
    %c0_15 = arith.constant 0 : index
    %22 = vector.load %arg7[%c0_14, %c0_15] : memref<8x384xf32, #tpu.memory_space<vmem>>, vector<8x128xf32>
    tpu.vector_store %arg7[%c0_14, %c0_15], %14 {strides = array<i32>} : memref<8x384xf32, #tpu.memory_space<vmem>>, vector<8x128xf32>,
    %c0_16 = arith.constant 0 : index
    %c128 = arith.constant 128 : index
    %23 = vector.load %arg7[%c0_16, %c128] : memref<8x384xf32, #tpu.memory_space<vmem>>, vector<8x128xf32>
    tpu.vector_store %arg7[%c0_16, %c128], %15 {strides = array<i32>} : memref<8x384xf32, #tpu.memory_space<vmem>>, vector<8x128xf32>,
    %c0_17 = arith.constant 0 : index
    %c256 = arith.constant 256 : index
    %24 = vector.load %arg7[%c0_17, %c256] : memref<8x384xf32, #tpu.memory_space<vmem>>, vector<8x128xf32>
    tpu.vector_store %arg7[%c0_17, %c256], %21 {strides = array<i32>} : memref<8x384xf32, #tpu.memory_space<vmem>>, vector<8x128xf32>,
    return
  }
  func.func @transform_0(%arg0: i32) -> (i32, i32) {
    %c0_i32 = arith.constant 0 : i32
    %c0_i32_0 = arith.constant 0 : i32
    return %arg0, %c0_i32 : i32, i32
  }
  func.func @transform_1(%arg0: i32) -> (i32, i32) {
    %c0_i32 = arith.constant 0 : i32
    %c0_i32_0 = arith.constant 0 : i32
    return %arg0, %c0_i32 : i32, i32
  }
  func.func @transform_2(%arg0: i32) -> (i32, i32) {
    %c0_i32 = arith.constant 0 : i32
    %c0_i32_0 = arith.constant 0 : i32
    %c0_i32_1 = arith.constant 0 : i32
    return %c0_i32, %c0_i32_0 : i32, i32
  }
  func.func @transform_3(%arg0: i32) -> (i32, i32) {
    %c0_i32 = arith.constant 0 : i32
    %c0_i32_0 = arith.constant 0 : i32
    %c0_i32_1 = arith.constant 0 : i32
    return %c0_i32, %c0_i32_0 : i32, i32
  }
  func.func @transform_4(%arg0: i32) -> (i32, i32) {
    %c0_i32 = arith.constant 0 : i32
    %c0_i32_0 = arith.constant 0 : i32
    %c0_i32_1 = arith.constant 0 : i32
    return %c0_i32, %c0_i32_0 : i32, i32
  }
  func.func @transform_5(%arg0: i32) -> (i32, i32) {
    %c0_i32 = arith.constant 0 : i32
    %c0_i32_0 = arith.constant 0 : i32
    %c0_i32_1 = arith.constant 0 : i32
    return %c0_i32, %c0_i32_0 : i32, i32
  }
  func.func @transform_6(%arg0: i32) -> (i32, i32) {
    %c0_i32 = arith.constant 0 : i32
    %c0_i32_0 = arith.constant 0 : i32
    return %arg0, %c0_i32 : i32, i32
  }
}

</mosaic_0001>

<bundles_post_ra>
// kernel: tpu_custom_call.1
= control target key start
LH: loop header
LB: loop body
LE: loop exit
PB: predicated region body
PF: predicated region fallthrough
CT: control target
= control target key end

     0   :  { %11 = vsyncpa [#allocation3], 0  ;;  %s641_s0 = inlined_call_operand.hbm [shape: bf16[8,128], index: 0, kind: input, shape index: {}]   ;;  %s642_s1 = inlined_call_operand.hbm [shape: f32[8,128], index: 1, kind: input, shape index: {}]   ;;  %s643_s2 = inlined_call_operand.hbm [shape: bf16[128,128], index: 2, kind: input, shape index: {}]   ;;  %s644_s3 = inlined_call_operand.vmem [shape: f32[1,128], index: 3, kind: input, shape index: {}]   ;;  %s645_s4 = inlined_call_operand.hbm [shape: bf16[128,256], index: 4, kind: input, shape index: {}]   ;;  %s646_s5 = inlined_call_operand.vmem [shape: f32[1,256], index: 5, kind: input, shape index: {}]   ;;  %s647_s6 = inlined_call_operand.hbm [shape: f32[8,384], index: 6, kind: output, shape index: {}]  }
   0x1   :  { %12 = vsyncpa [#allocation6], 0 }
   0x2   :  { %13 = vsyncpa [#allocation9], 0 }
   0x3   :  { %14 = vsyncpa [#allocation4], 0  ;;  %s573_s21 = smov [#allocation5]   ;;  %s574_s23 = smov [#allocation2]  }
   0x4   :  { %s31_s22 = sshll.u32 %s573_s21, 4  ;;  %s21_s24 = sshll.u32 %s574_s23, 4  ;;  %s32_s22 = int_to_ptr.vmem [resolvable:$true] %s31_s22  ;;  %s22_s24 = int_to_ptr.vmem [resolvable:$true] %s21_s24 }
   0x5   :  { %s473_s25 = scalar_lea.vmem %s32_s22, 128  ;;  %p478_p1 = scmp.lt.s32.totalorder %s32_s22, %s32_s22 }
   0x6   :  { %p474_p0 = scmp.ne.s32.totalorder %s32_s22, %s473_s25  ;;  %p479_p2 = scmp.lt.s32.totalorder %s473_s25, %s473_s25 }
   0x8   :  { %p480_p3 = por %p479_p2, %p478_p1 }
   0xa   :  { %p481_p4 = pnand %p480_p3, %p474_p0 }
   0xc   :  { %484 = shalt.err (!%p481_p4)
}
   0xd   :  { %34 = dma.hbm_to_vmem [thread:$0]  %s642_s1, 128, %s32_s22, [#allocation6]  }
   0xe   :  { %s493_s28 = scalar_lea.vmem %s22_s24, 64  ;;  %p498_p6 = scmp.lt.s32.totalorder %s22_s24, %s22_s24 }
   0xf   :  { %p494_p5 = scmp.ne.s32.totalorder %s22_s24, %s493_s28  ;;  %p499_p7 = scmp.lt.s32.totalorder %s493_s28, %s493_s28 }
  0x11   :  { %p500_p8 = por %p499_p7, %p498_p6 }
  0x13   :  { %p501_p9 = pnand %p500_p8, %p494_p5 }
  0x15   :  { %504 = shalt.err (!%p501_p9)
}
  0x16   :  { %24 = dma.hbm_to_vmem [thread:$0]  %s641_s0, 64, %s22_s24, [#allocation3]  }
  0x17   :  { %s575_s7 = smov [#allocation7]  }
  0x18   :  { %s40_s8 = sshll.u32 %s575_s7, 4  ;;  %s41_s8 = int_to_ptr.vmem [resolvable:$true] %s40_s8 }
  0x19   :  { %s513_s9 = scalar_lea.vmem %s41_s8, 1024  ;;  %p518_p11 = scmp.lt.s32.totalorder %s41_s8, %s41_s8 }
  0x1a   :  { %p514_p10 = scmp.ne.s32.totalorder %s41_s8, %s513_s9  ;;  %p519_p12 = scmp.lt.s32.totalorder %s513_s9, %s513_s9 }
  0x1c   :  { %p520_p13 = por %p519_p12, %p518_p11 }
  0x1e   :  { %p521_p0 = pnand %p520_p13, %p514_p10 }
  0x20   :  { %524 = shalt.err (!%p521_p0)
}
  0x21   :  { %s576_s1 = smov 64   ;;  %s577_s10 = smov 4  }
  0x22   :  { %46 = dma.hbm_to_vmem [thread:$0]  %s643_s2, 1024, %s41_s8, [#allocation6], %s576_s1, %s576_s1, %s577_s10  }
  0x23   :  { %s578_s13 = smov [#allocation8]  }
  0x24   :  { %s54_s14 = sshll.u32 %s578_s13, 4  ;;  %s55_s14 = int_to_ptr.vmem [resolvable:$true] %s54_s14 }
  0x25   :  { %s533_s0 = scalar_lea.vmem %s55_s14, 2048  ;;  %p538_p2 = scmp.lt.s32.totalorder %s55_s14, %s55_s14 }
  0x26   :  { %p534_p1 = scmp.ne.s32.totalorder %s55_s14, %s533_s0  ;;  %p539_p3 = scmp.lt.s32.totalorder %s533_s0, %s533_s0 }
  0x28   :  { %p540_p4 = por %p539_p3, %p538_p2 }
  0x2a   :  { %p541_p5 = pnand %p540_p4, %p534_p1 }
  0x2c   :  { %544 = shalt.err (!%p541_p5)
}
  0x2d   :  { %s579_s15 = smov 128   ;;  %s580_s16 = smov 8  }
  0x2e   :  { %60 = dma.hbm_to_vmem [thread:$0]  %s645_s4, 2048, %s55_s14, [#allocation9], %s579_s15, %s579_s15, %s580_s16  }
  0x2f   :  { %565 = dma.done.wait [#allocation3], 64  }
  0x30   :  { %566 = vsyncadd [#allocation3], 4294967232 }
  0x31   :  { %567 = dma.done.wait [#allocation6], 1152  }
  0x32   :  { %568 = vsyncadd [#allocation6], 4294966144 }
  0x33   :  { %569 = dma.done.wait [#allocation9], 2048  }
  0x34   :  { %570 = vsyncadd [#allocation9], 4294965248  ;;  %v581_v0 = vmov 0.0   ;;  %vm582_vm0 = vmmov 0   ;;  %v431_v1 = vld [vmem:[#allocation7 + $0x38] sm:$0xff]   ;;  %v432_v2 = vld [vmem:[#allocation7 + $0x30] sm:$0xff]   ;;  %v208_v35 = vlaneseq }
  0x35   :  { %399 = vmatprep.subr.bf16.mxu0 %v581_v0  ;;  %415 = vmatprep.mubr.msk.bf16.mxu0 %vm582_vm0, %v581_v0  ;;  %v433_v3 = vld [vmem:[#allocation7 + $0x28] sm:$0xff]   ;;  %v439_v4 = vld [vmem:[#allocation8 + $0x74] ss:$8 sps:$4 sm:$0xff]   ;;  %v441_v5 = vld [vmem:[#allocation8 + $0x70] ss:$8 sps:$4 sm:$0xff]   ;;  %v583_v26 = vmov 0  }
  0x36   :  { %400 = vmatpush3.bf16.msra.mxu0 %v431_v1  ;;  %v434_v6 = vld [vmem:[#allocation7 + $0x20] sm:$0xff]   ;;  %298 = vmatprep.subr.bf16.mxu1 %v439_v4  ;;  %v445_v9 = vld [vmem:[#allocation8 + $0x54] ss:$8 sps:$4 sm:$0xff]   ;;  %v447_v11 = vld [vmem:[#allocation8 + $0x50] ss:$8 sps:$4 sm:$0xff]   ;;  %v209_v36 = vshrl.u32 %v208_v35, 7 }
  0x37   :  { %401 = vmatprep.subr.bf16.mxu0 %v581_v0  ;;  %v442_v7 = vld [vmem:[#allocation8 + $0x64] ss:$8 sps:$4 sm:$0xff]   ;;  %299 = vmatpush1.bf16.msra.mxu1 %v441_v5  ;;  %v444_v8 = vld [vmem:[#allocation8 + $0x60] ss:$8 sps:$4 sm:$0xff]   ;;  %v435_v10 = vld [vmem:[#allocation7 + $0x18] sm:$0xff]  }
  0x38   :  { %300 = vmatprep.subr.bf16.mxu1 %v442_v7  ;;  %v448_v12 = vld [vmem:[#allocation8 + $0x44] ss:$8 sps:$4 sm:$0xff]   ;;  %v436_v13 = vld [vmem:[#allocation7 + $0x10] sm:$0xff]   ;;  %v450_v14 = vld [vmem:[#allocation8 + $0x40] ss:$8 sps:$4 sm:$0xff]   ;;  %330 = vmatprep.mubr.bf16.mxu1 %v583_v26  ;;  %v210_v37 = vsub.s32 0, %v209_v36 }
  0x39   :  { %v451_v15 = vld [vmem:[#allocation8 + $0x34] ss:$8 sps:$4 sm:$0xff]   ;;  %v437_v16 = vld [vmem:[#allocation7 + $0x8] sm:$0xff]   ;;  %v453_v17 = vld [vmem:[#allocation8 + $0x30] ss:$8 sps:$4 sm:$0xff]   ;;  %v214_v39 = vsub.s32 1, %v209_v36 }
  0x3a   :  { %402 = vmatpush3.bf16.msra.mxu0 %v432_v2  ;;  %v454_v18 = vld [vmem:[#allocation8 + $0x24] ss:$8 sps:$4 sm:$0xff]   ;;  %v456_v20 = vld [vmem:[#allocation8 + $0x20] ss:$8 sps:$4 sm:$0xff]   ;;  %v457_v21 = vld [vmem:[#allocation8 + $0x14] ss:$8 sps:$4 sm:$0xff]  }
  0x3b   :  { %403 = vmatprep.subr.bf16.mxu0 %v581_v0  ;;  %301 = vmatpush1.bf16.msra.mxu1 %v444_v8  ;;  %v438_v19 = vld [vmem:[#allocation7] sm:$0xff]   ;;  %v76_v22 = vld [vmem:[#allocation2] sm:$0xf]  ;;  %v459_v23 = vld [vmem:[#allocation8 + $0x10] ss:$8 sps:$4 sm:$0xff]  }
  0x3c   :  { %302 = vmatprep.subr.bf16.mxu1 %v445_v9  ;;  %v460_v24 = vld [vmem:[#allocation8 + $0x4] ss:$8 sps:$4 sm:$0xff]   ;;  %v462_v25 = vld [vmem:[#allocation8] ss:$8 sps:$4 sm:$0xff]   ;;  %v365_v27 = vld [vmem:[%s644_s3] ss:$0 sm:$0xff] }
  0x3d   :  { %v206_v38 = vld [vmem:[%s646_s5] sm:$0x3]  ;;  %v342_v50 = vld [vmem:[#allocation5] sm:$0xff]  ;;  %s584_s3 = smov [#allocation10]  }
  0x3e   :  { %404 = vmatpush3.bf16.msra.mxu0 %v433_v3  ;;  %v211_v40 = vrot.slane %v206_v38, %v210_v37  ;;  %v215_v41 = vrot.slane %v206_v38, %v214_v39  ;;  %s354_s21 = sshll.u32 %s584_s3, 4  ;;  %s355_s21 = int_to_ptr.vmem [resolvable:$true] %s354_s21 }
  0x3f   :  { %405 = vmatprep.subr.bf16.mxu0 %v581_v0  ;;  %303 = vmatpush1.bf16.msra.mxu1 %v447_v11  ;;  %s545_s5 = scalar_lea.vmem %s355_s21, 384  ;;  %p550_p7 = scmp.lt.s32.totalorder %s355_s21, %s355_s21 }
  0x40   :  { %304 = vmatprep.subr.bf16.mxu1 %v448_v12  ;;  %p546_p6 = scmp.ne.s32.totalorder %s355_s21, %s545_s5  ;;  %p551_p8 = scmp.lt.s32.totalorder %s545_s5, %s545_s5 }
  0x42   :  { %406 = vmatpush3.bf16.msra.mxu0 %v434_v6  ;;  %p552_p9 = por %p551_p8, %p550_p7 }
  0x43   :  { %407 = vmatprep.subr.bf16.mxu0 %v581_v0  ;;  %305 = vmatpush1.bf16.msra.mxu1 %v450_v14 }
  0x44   :  { %306 = vmatprep.subr.bf16.mxu1 %v451_v15  ;;  %p553_p10 = pnand %p552_p9, %p546_p6 }
  0x46   :  { %408 = vmatpush3.bf16.msra.mxu0 %v435_v10 }
  0x47   :  { %409 = vmatprep.subr.bf16.mxu0 %v581_v0  ;;  %307 = vmatpush1.bf16.msra.mxu1 %v453_v17 }
  0x48   :  { %308 = vmatprep.subr.bf16.mxu1 %v454_v18 }
  0x4a   :  { %410 = vmatpush3.bf16.msra.mxu0 %v436_v13 }
  0x4b   :  { %411 = vmatprep.subr.bf16.mxu0 %v581_v0  ;;  %309 = vmatpush1.bf16.msra.mxu1 %v456_v20 }
  0x4c   :  { %310 = vmatprep.subr.bf16.mxu1 %v457_v21 }
  0x4e   :  { %412 = vmatpush3.bf16.msra.mxu0 %v437_v16 }
  0x4f   :  { %413 = vmatprep.subr.bf16.mxu0 %v581_v0  ;;  %311 = vmatpush1.bf16.msra.mxu1 %v459_v23 }
  0x50   :  { %312 = vmatprep.subr.bf16.mxu1 %v460_v24 }
  0x52   :  { %414 = vmatpush3.bf16.msra.mxu0 %v438_v19 }
  0x53   :  { %313 = vmatpush1.bf16.msra.mxu1 %v462_v25 }
  0x55   :  { %416 = vmatmul.mubr.bf16.vlgmr.msra.gmra.mxu0 %v76_v22 }
 0x115   :  { %v182_v28 = vpop.f32.mrf.mxu0 }
 0x116   :  { %v183_v29 = vadd.f32 %v365_v27, %v182_v28 }
 0x117   :  { %v417_v30 = vpop.f32.mrf.mxu0 }
 0x118   :  { %v188_v31 = vmax.f32 %v183_v29, 0.0 }
 0x119   :  { %v185_v32 = vpop.f32.mrf.mxu0 }
 0x11a   :  { %v189_v33 = vpack.c.bf16 %v188_v31, %v188_v31 }
 0x11b   :  { %v418_v34 = vpop.f32.mrf.mxu0 }
 0x11c   :  { %331 = vmatmul.mubr.bf16.vlgmr.msra.gmra.mxu1 %v189_v33 }
 0x1dc   :  { %v332_v42 = vpop.f32.mrf.mxu1 }
 0x1dd   :  { %v333_v43 = vadd.f32 %v332_v42, %v211_v40 }
 0x1de   :  { %v334_v44 = vpop.f32.mrf.mxu1 }
 0x1df   :  { %345 = vst [vmem:[#allocation10] sm:$0xff] %v333_v43  ;;  %v335_v45 = vadd.f32 %v334_v44, %v215_v41 }
 0x1e0   :  { %v336_v46 = vpop.f32.mrf.mxu1 }
 0x1e1   :  { %v339_v47 = vmul.f32 0.5, %v335_v45  ;;  %346 = vst [vmem:[#allocation10 + $0x8] sm:$0xff] %v335_v45 }
 0x1e2   :  { %v337_v48 = vpop.f32.mrf.mxu1 }
 0x1e3   :  { %v340_v49 = vmul.f32 1.442695, %v339_v47 }
 0x1e5   :  { %463 = vpow2.f32 %v340_v49 }
 0x1f2   :  { %v464_v51 = vpop.eup %463 }
 0x1f3   :  { %v343_v52 = vmul.f32 %v464_v51, %v342_v50 }
 0x1f5   :  { %v344_v53 = vadd.f32 %v343_v52, %v333_v43 }
 0x1f7   :  { %347 = vst [vmem:[#allocation10 + $0x10] sm:$0xff] %v344_v53 }
 0x1f8   :  { %556 = shalt.err (!%p553_p10)
}
 0x1f9   :  { %357 = dma.vmem_to_hbm [thread:$0]  %s355_s21, 384, %s647_s6, [#allocation4]  }
 0x1fa   :  { %571 = dma.done.wait [#allocation4], 384  }
 0x1fb   :  { %572 = vsyncadd [#allocation4], 4294966912 }
 0x1fc   :  { %361 = vsyncpa [#allocation3], 1 }
 0x1fd   :  { %362 = vsyncpa [#allocation6], 1 }
 0x1fe   :  { %363 = vsyncpa [#allocation9], 1 }
 0x1ff   :  { %364 = vsyncpa [#allocation4], 1 }

</bundles_post_ra>
